<compile_context>
chip_gen: v7x
topology: tpu7x:2x2x1
jax: 0.10.0
libtpu: 0.0.40
codegen_flags: <defaults>
</compile_context>

<pallas_src>
import functools

import jax
import jax.numpy as jnp
from jax import lax
from jax.experimental import pallas as pl
from jax.experimental.pallas import tpu as pltpu


def _sppf_kernel(col_ref, x_ref, o_ref, *, W, pool):
    """One (batch, channel-block) tile per grid step.

    col_ref : (1, H*W) int32   column index (p mod W), precomputed in wrapper
    x_ref   : (1, cb, H*W)     input channels, spatial plane flattened on lanes
    o_ref   : (1, 4, cb, H*W)  branches [x, pool(x), pool^2(x), pool^3(x)]
    """
    pad = pool // 2
    a = x_ref[0]                                   # (cb, HW)
    cb, hw = a.shape
    H = hw // W
    dt = a.dtype
    neg = jnp.asarray(-jnp.inf, dt)

    col = col_ref[...]                             # (1, HW) int32: p mod W
    pos = lax.broadcasted_iota(jnp.int32, (1, hw), 1)   # flat position p

    use_tree = (pad == 2)                          # pool_size == 5 fast path

    def bc(m):
        # Hoisted mask broadcast: built once, reused by all 3 chained pools
        # (JAX does not CSE broadcast_in_dim inserted per jnp.where call).
        return jnp.broadcast_to(m, (cb, hw))

    # Validity masks per shift distance.  The tree path only ever needs the
    # distance-1 masks; distances with no in-bounds neighbour are omitted.
    w_dists = [1] if (use_tree and W >= 2) else [d for d in range(1, pad + 1) if d < W]
    h_dists = [1] if (use_tree and H >= 2) else [d for d in range(1, pad + 1) if d < H]
    w_masks = {d: (bc(col < (W - d)), bc(col >= d)) for d in w_dists}
    h_masks = {d: (bc(pos < (hw - d * W)), bc(pos >= d * W)) for d in h_dists}

    def nbr(v, s, valid):
        # b[:, p] = v[:, p + s] where valid else -inf.  The lane rotation's
        # wrap-around is exactly what the masks kill (row crossings for the
        # W direction, top/bottom rows for the H direction).
        return jnp.where(valid, pltpu.roll(v, (-s) % hw, axis=1), neg)

    def max_1d(v, step, masks):
        # 1-D sliding max over offsets -pad..+pad (times `step`) along one
        # spatial axis.
        if use_tree and 1 in masks:
            plus, minus = masks[1]
            t = jnp.maximum(jnp.maximum(v, nbr(v, step, plus)),
                            nbr(v, -step, minus))
            return jnp.maximum(nbr(t, step, plus), nbr(t, -step, minus))
        out = v
        for d, (plus, minus) in masks.items():
            out = jnp.maximum(out, nbr(v, d * step, plus))
            out = jnp.maximum(out, nbr(v, -d * step, minus))
        return out

    def pool_once(v):
        # max is associative -> separable: k-wide along W, then k-wide along H.
        return max_1d(max_1d(v, 1, w_masks), W, h_masks)

    o_ref[0, 0] = a
    o1 = pool_once(a)
    o_ref[0, 1] = o1
    o2 = pool_once(o1)
    o_ref[0, 2] = o2
    o_ref[0, 3] = pool_once(o2)


def sppf(x, *, pool_size=5):
    """x: (N, C, H, W) float -> (N, 4*C, H, W); max mode, stride 1, pad k//2."""
    if pool_size % 2 != 1:
        # TODO(synk): even pool sizes use asymmetric padding in PyTorch; not supported.
        raise NotImplementedError("SPPF kernel assumes an odd pool_size.")
    N, C, H, W = x.shape
    HW = H * W
    dt = x.dtype
    itemsize = dt.itemsize
    xf = x.reshape(N, C, HW)                       # free view, no transpose

    # Column-index row (p mod W), used for the in-kernel boundary masks.
    col = (jnp.arange(HW, dtype=jnp.int32) % W).reshape(1, HW)

    # ---------------- channel-block (cb) selection ----------------
    plane_bytes = HW * itemsize
    sub = 8 * max(1, 4 // itemsize)                # sublane packing: 8 f32, 16 bf16

    # Honest per-step footprint per channel: 2x input block + 2x 4-branch
    # output block (pipeline double buffers) + ~6 live compute planes.
    planes_per_chan = 2 + 8 + 6
    budget = 4 << 20                               # ~4 MiB/step: safe under v5e's 16 MiB
    cb = max(1, min(C, budget // (planes_per_chan * plane_bytes)))

    # Keep >= 2 grid steps so both of v7x's TensorCores work and the input /
    # 4x-amplified output DMAs stay double-buffered.
    if N == 1 and cb >= C and C >= 2 * sub:
        cb = (C + 1) // 2

    if cb < C:
        cb = max(sub, (cb // sub) * sub)           # (8*packing, 128) tiling rule
        # Prefer a divisor of C (no ragged tail of wasted pooling work), as
        # long as it does not shrink the block by more than 2x.
        d = cb
        while d >= sub and C % d != 0:
            d -= sub
        if d >= sub and 2 * d >= cb:
            cb = d
        cb = min(cb, C)
    # TODO(synk): feature maps with very large H*W (plane >> 1 MiB) would need
    # spatial tiling with a (pool_size//2)-row halo; SPPF inputs are small,
    # so only the channel axis is tiled.

    grid = (N, pl.cdiv(C, cb))
    block_bytes = 5 * cb * HW * itemsize           # 1 input + 4 output planes per step
    vmem_limit = int(min(48 << 20, max(16 << 20, 4 * block_bytes)))

    out = pl.pallas_call(
        functools.partial(_sppf_kernel, W=W, pool=pool_size),
        out_shape=jax.ShapeDtypeStruct((N, 4, C, HW), dt),
        grid=grid,
        in_specs=[
            pl.BlockSpec((1, HW), lambda n, c: (0, 0)),         # col indices
            pl.BlockSpec((1, cb, HW), lambda n, c: (n, c, 0)),  # input block
        ],
        out_specs=pl.BlockSpec((1, 4, cb, HW), lambda n, c: (n, 0, c, 0)),
        compiler_params=pltpu.CompilerParams(
            dimension_semantics=("parallel", "parallel"),
            vmem_limit_bytes=vmem_limit),
        cost_estimate=pl.CostEstimate(
            flops=40 * N * C * HW,                  # ~(18 max + 24 select)/elem
            transcendentals=0,
            bytes_accessed=5 * N * C * HW * itemsize),
    )(col, xf)

    # (N, 4, C, H*W) -> (N, 4*C, H, W): contiguous reshape, free view.
    # Channel k = branch*C + c, matching torch.cat([x, o1, o2, o3], dim=1).
    return out.reshape(N, 4 * C, H, W)


# TODO(synk): mode='avg' (nn.AvgPool2d branch) is not implemented; the module
# default is mode='max', which is what this kernel provides.


def _ref_sppf(x, pool_size=5):
    """Pure-JAX reference (lax.reduce_window) for verification."""
    pad = pool_size // 2

    def pool(a):
        return lax.reduce_window(
            a, -jnp.inf, lax.max,
            window_dimensions=(1, 1, pool_size, pool_size),
            window_strides=(1, 1, 1, 1),
            padding=((0, 0), (0, 0), (pad, pad), (pad, pad)))

    o1 = pool(x)
    o2 = pool(o1)
    o3 = pool(o2)
    return jnp.concatenate([x, o1, o2, o3], axis=1)


if __name__ == "__main__":
    key = jax.random.PRNGKey(0)
    N, C, H, W = 2, 4, 16, 16
    x = jax.random.normal(key, (N, C, H, W), dtype=jnp.float32)

    out = jax.block_until_ready(sppf(x))
    ref = jax.block_until_ready(_ref_sppf(x))

    assert out.shape == (N, 4 * C, H, W), out.shape
    assert jnp.allclose(out, ref), "mismatch vs reference"
    print("KERNEL_OK")
</pallas_src>

<mosaic_0001>
module attributes {stable_mosaic.version = 11 : i64} {
  func.func @_sppf_kernel(%arg0: i32, %arg1: i32, %arg2: memref<1x256xi32, #tpu.memory_space<vmem>>, %arg3: memref<1x4x256xf32, #tpu.memory_space<vmem>>, %arg4: memref<1x4x4x256xf32, #tpu.memory_space<vmem>>) attributes {dimension_semantics = [#tpu.dimension_semantics<parallel>, #tpu.dimension_semantics<parallel>], iteration_bounds = array<i64: 2, 1>, scalar_prefetch = 0 : i64, scratch_operands = 0 : i64, tpu.core_type = #tpu.core_type<tc>, window_params = [{pipeline_mode = #tpu.pipeline_mode<synchronous>, transform_indices = @transform_0, window_bounds = array<i64: 1, 256>}, {transform_indices = @transform_1, window_bounds = array<i64: 1, 4, 256>}, {transform_indices = @transform_2, window_bounds = array<i64: 1, 4, 4, 256>}]} {
    %c0 = arith.constant 0 : index
    %c0_0 = arith.constant 0 : index
    %c0_1 = arith.constant 0 : index
    %0 = vector.load %arg3[%c0, %c0_0, %c0_1] : memref<1x4x256xf32, #tpu.memory_space<vmem>>, vector<1x4x256xf32>
    %1 = vector.shape_cast %0 : vector<1x4x256xf32> to vector<4x256xf32>
    %c0_2 = arith.constant 0 : index
    %c0_3 = arith.constant 0 : index
    %2 = vector.load %arg2[%c0_2, %c0_3] : memref<1x256xi32, #tpu.memory_space<vmem>>, vector<1x256xi32>
    %3 = tpu.iota {dimensions = array<i32: 1>} : vector<1x256xi32>
    %c15_i32 = arith.constant 15 : i32
    %4 = vector.broadcast %c15_i32 : i32 to vector<1x256xi32>
    %5 = arith.cmpi slt, %2, %4 : vector<1x256xi32>
    %6 = vector.shape_cast %5 : vector<1x256xi1> to vector<1x256xi1>
    %7 = vector.broadcast %6 : vector<1x256xi1> to vector<4x256xi1>
    %c1_i32 = arith.constant 1 : i32
    %8 = vector.broadcast %c1_i32 : i32 to vector<1x256xi32>
    %9 = arith.cmpi sge, %2, %8 : vector<1x256xi32>
    %10 = vector.shape_cast %9 : vector<1x256xi1> to vector<1x256xi1>
    %11 = vector.broadcast %10 : vector<1x256xi1> to vector<4x256xi1>
    %c240_i32 = arith.constant 240 : i32
    %12 = vector.broadcast %c240_i32 : i32 to vector<1x256xi32>
    %13 = arith.cmpi slt, %3, %12 : vector<1x256xi32>
    %14 = vector.shape_cast %13 : vector<1x256xi1> to vector<1x256xi1>
    %15 = vector.broadcast %14 : vector<1x256xi1> to vector<4x256xi1>
    %c16_i32 = arith.constant 16 : i32
    %16 = vector.broadcast %c16_i32 : i32 to vector<1x256xi32>
    %17 = arith.cmpi sge, %3, %16 : vector<1x256xi32>
    %18 = vector.shape_cast %17 : vector<1x256xi1> to vector<1x256xi1>
    %19 = vector.broadcast %18 : vector<1x256xi1> to vector<4x256xi1>
    %c0_4 = arith.constant 0 : index
    %c0_5 = arith.constant 0 : index
    %c0_6 = arith.constant 0 : index
    %c0_7 = arith.constant 0 : index
    %20 = vector.load %arg4[%c0_4, %c0_5, %c0_6, %c0_7] : memref<1x4x4x256xf32, #tpu.memory_space<vmem>>, vector<1x1x4x256xf32>
    %21 = vector.shape_cast %20 : vector<1x1x4x256xf32> to vector<4x256xf32>
    %22 = vector.shape_cast %1 : vector<4x256xf32> to vector<1x1x4x256xf32>
    tpu.vector_store %arg4[%c0_4, %c0_5, %c0_6, %c0_7], %22 {strides = array<i32>} : memref<1x4x4x256xf32, #tpu.memory_space<vmem>>, vector<1x1x4x256xf32>,
    %c255_i32 = arith.constant 255 : i32
    %23 = tpu.dynamic_rotate %1 by %c255_i32 dim 1 : vector<4x256xf32>, i32 -> vector<4x256xf32>
    %cst = arith.constant 0xFF800000 : f32
    %24 = vector.broadcast %cst : f32 to vector<4x256xf32>
    %25 = arith.select %7, %23, %24 : vector<4x256xi1>, vector<4x256xf32>
    %26 = arith.maximumf %1, %25 : vector<4x256xf32>
    %c1_i32_8 = arith.constant 1 : i32
    %27 = tpu.dynamic_rotate %1 by %c1_i32_8 dim 1 : vector<4x256xf32>, i32 -> vector<4x256xf32>
    %cst_9 = arith.constant 0xFF800000 : f32
    %28 = vector.broadcast %cst_9 : f32 to vector<4x256xf32>
    %29 = arith.select %11, %27, %28 : vector<4x256xi1>, vector<4x256xf32>
    %30 = arith.maximumf %26, %29 : vector<4x256xf32>
    %c255_i32_10 = arith.constant 255 : i32
    %31 = tpu.dynamic_rotate %30 by %c255_i32_10 dim 1 : vector<4x256xf32>, i32 -> vector<4x256xf32>
    %cst_11 = arith.constant 0xFF800000 : f32
    %32 = vector.broadcast %cst_11 : f32 to vector<4x256xf32>
    %33 = arith.select %7, %31, %32 : vector<4x256xi1>, vector<4x256xf32>
    %c1_i32_12 = arith.constant 1 : i32
    %34 = tpu.dynamic_rotate %30 by %c1_i32_12 dim 1 : vector<4x256xf32>, i32 -> vector<4x256xf32>
    %cst_13 = arith.constant 0xFF800000 : f32
    %35 = vector.broadcast %cst_13 : f32 to vector<4x256xf32>
    %36 = arith.select %11, %34, %35 : vector<4x256xi1>, vector<4x256xf32>
    %37 = arith.maximumf %33, %36 : vector<4x256xf32>
    %c240_i32_14 = arith.constant 240 : i32
    %38 = tpu.dynamic_rotate %37 by %c240_i32_14 dim 1 : vector<4x256xf32>, i32 -> vector<4x256xf32>
    %cst_15 = arith.constant 0xFF800000 : f32
    %39 = vector.broadcast %cst_15 : f32 to vector<4x256xf32>
    %40 = arith.select %15, %38, %39 : vector<4x256xi1>, vector<4x256xf32>
    %41 = arith.maximumf %37, %40 : vector<4x256xf32>
    %c16_i32_16 = arith.constant 16 : i32
    %42 = tpu.dynamic_rotate %37 by %c16_i32_16 dim 1 : vector<4x256xf32>, i32 -> vector<4x256xf32>
    %cst_17 = arith.constant 0xFF800000 : f32
    %43 = vector.broadcast %cst_17 : f32 to vector<4x256xf32>
    %44 = arith.select %19, %42, %43 : vector<4x256xi1>, vector<4x256xf32>
    %45 = arith.maximumf %41, %44 : vector<4x256xf32>
    %c240_i32_18 = arith.constant 240 : i32
    %46 = tpu.dynamic_rotate %45 by %c240_i32_18 dim 1 : vector<4x256xf32>, i32 -> vector<4x256xf32>
    %cst_19 = arith.constant 0xFF800000 : f32
    %47 = vector.broadcast %cst_19 : f32 to vector<4x256xf32>
    %48 = arith.select %15, %46, %47 : vector<4x256xi1>, vector<4x256xf32>
    %c16_i32_20 = arith.constant 16 : i32
    %49 = tpu.dynamic_rotate %45 by %c16_i32_20 dim 1 : vector<4x256xf32>, i32 -> vector<4x256xf32>
    %cst_21 = arith.constant 0xFF800000 : f32
    %50 = vector.broadcast %cst_21 : f32 to vector<4x256xf32>
    %51 = arith.select %19, %49, %50 : vector<4x256xi1>, vector<4x256xf32>
    %52 = arith.maximumf %48, %51 : vector<4x256xf32>
    %c0_22 = arith.constant 0 : index
    %c1 = arith.constant 1 : index
    %c0_23 = arith.constant 0 : index
    %c0_24 = arith.constant 0 : index
    %53 = vector.load %arg4[%c0_22, %c1, %c0_23, %c0_24] : memref<1x4x4x256xf32, #tpu.memory_space<vmem>>, vector<1x1x4x256xf32>
    %54 = vector.shape_cast %53 : vector<1x1x4x256xf32> to vector<4x256xf32>
    %55 = vector.shape_cast %52 : vector<4x256xf32> to vector<1x1x4x256xf32>
    tpu.vector_store %arg4[%c0_22, %c1, %c0_23, %c0_24], %55 {strides = array<i32>} : memref<1x4x4x256xf32, #tpu.memory_space<vmem>>, vector<1x1x4x256xf32>,
    %c255_i32_25 = arith.constant 255 : i32
    %56 = tpu.dynamic_rotate %52 by %c255_i32_25 dim 1 : vector<4x256xf32>, i32 -> vector<4x256xf32>
    %cst_26 = arith.constant 0xFF800000 : f32
    %57 = vector.broadcast %cst_26 : f32 to vector<4x256xf32>
    %58 = arith.select %7, %56, %57 : vector<4x256xi1>, vector<4x256xf32>
    %59 = arith.maximumf %52, %58 : vector<4x256xf32>
    %c1_i32_27 = arith.constant 1 : i32
    %60 = tpu.dynamic_rotate %52 by %c1_i32_27 dim 1 : vector<4x256xf32>, i32 -> vector<4x256xf32>
    %cst_28 = arith.constant 0xFF800000 : f32
    %61 = vector.broadcast %cst_28 : f32 to vector<4x256xf32>
    %62 = arith.select %11, %60, %61 : vector<4x256xi1>, vector<4x256xf32>
    %63 = arith.maximumf %59, %62 : vector<4x256xf32>
    %c255_i32_29 = arith.constant 255 : i32
    %64 = tpu.dynamic_rotate %63 by %c255_i32_29 dim 1 : vector<4x256xf32>, i32 -> vector<4x256xf32>
    %cst_30 = arith.constant 0xFF800000 : f32
    %65 = vector.broadcast %cst_30 : f32 to vector<4x256xf32>
    %66 = arith.select %7, %64, %65 : vector<4x256xi1>, vector<4x256xf32>
    %c1_i32_31 = arith.constant 1 : i32
    %67 = tpu.dynamic_rotate %63 by %c1_i32_31 dim 1 : vector<4x256xf32>, i32 -> vector<4x256xf32>
    %cst_32 = arith.constant 0xFF800000 : f32
    %68 = vector.broadcast %cst_32 : f32 to vector<4x256xf32>
    %69 = arith.select %11, %67, %68 : vector<4x256xi1>, vector<4x256xf32>
    %70 = arith.maximumf %66, %69 : vector<4x256xf32>
    %c240_i32_33 = arith.constant 240 : i32
    %71 = tpu.dynamic_rotate %70 by %c240_i32_33 dim 1 : vector<4x256xf32>, i32 -> vector<4x256xf32>
    %cst_34 = arith.constant 0xFF800000 : f32
    %72 = vector.broadcast %cst_34 : f32 to vector<4x256xf32>
    %73 = arith.select %15, %71, %72 : vector<4x256xi1>, vector<4x256xf32>
    %74 = arith.maximumf %70, %73 : vector<4x256xf32>
    %c16_i32_35 = arith.constant 16 : i32
    %75 = tpu.dynamic_rotate %70 by %c16_i32_35 dim 1 : vector<4x256xf32>, i32 -> vector<4x256xf32>
    %cst_36 = arith.constant 0xFF800000 : f32
    %76 = vector.broadcast %cst_36 : f32 to vector<4x256xf32>
    %77 = arith.select %19, %75, %76 : vector<4x256xi1>, vector<4x256xf32>
    %78 = arith.maximumf %74, %77 : vector<4x256xf32>
    %c240_i32_37 = arith.constant 240 : i32
    %79 = tpu.dynamic_rotate %78 by %c240_i32_37 dim 1 : vector<4x256xf32>, i32 -> vector<4x256xf32>
    %cst_38 = arith.constant 0xFF800000 : f32
    %80 = vector.broadcast %cst_38 : f32 to vector<4x256xf32>
    %81 = arith.select %15, %79, %80 : vector<4x256xi1>, vector<4x256xf32>
    %c16_i32_39 = arith.constant 16 : i32
    %82 = tpu.dynamic_rotate %78 by %c16_i32_39 dim 1 : vector<4x256xf32>, i32 -> vector<4x256xf32>
    %cst_40 = arith.constant 0xFF800000 : f32
    %83 = vector.broadcast %cst_40 : f32 to vector<4x256xf32>
    %84 = arith.select %19, %82, %83 : vector<4x256xi1>, vector<4x256xf32>
    %85 = arith.maximumf %81, %84 : vector<4x256xf32>
    %c0_41 = arith.constant 0 : index
    %c2 = arith.constant 2 : index
    %c0_42 = arith.constant 0 : index
    %c0_43 = arith.constant 0 : index
    %86 = vector.load %arg4[%c0_41, %c2, %c0_42, %c0_43] : memref<1x4x4x256xf32, #tpu.memory_space<vmem>>, vector<1x1x4x256xf32>
    %87 = vector.shape_cast %86 : vector<1x1x4x256xf32> to vector<4x256xf32>
    %88 = vector.shape_cast %85 : vector<4x256xf32> to vector<1x1x4x256xf32>
    tpu.vector_store %arg4[%c0_41, %c2, %c0_42, %c0_43], %88 {strides = array<i32>} : memref<1x4x4x256xf32, #tpu.memory_space<vmem>>, vector<1x1x4x256xf32>,
    %c255_i32_44 = arith.constant 255 : i32
    %89 = tpu.dynamic_rotate %85 by %c255_i32_44 dim 1 : vector<4x256xf32>, i32 -> vector<4x256xf32>
    %cst_45 = arith.constant 0xFF800000 : f32
    %90 = vector.broadcast %cst_45 : f32 to vector<4x256xf32>
    %91 = arith.select %7, %89, %90 : vector<4x256xi1>, vector<4x256xf32>
    %92 = arith.maximumf %85, %91 : vector<4x256xf32>
    %c1_i32_46 = arith.constant 1 : i32
    %93 = tpu.dynamic_rotate %85 by %c1_i32_46 dim 1 : vector<4x256xf32>, i32 -> vector<4x256xf32>
    %cst_47 = arith.constant 0xFF800000 : f32
    %94 = vector.broadcast %cst_47 : f32 to vector<4x256xf32>
    %95 = arith.select %11, %93, %94 : vector<4x256xi1>, vector<4x256xf32>
    %96 = arith.maximumf %92, %95 : vector<4x256xf32>
    %c255_i32_48 = arith.constant 255 : i32
    %97 = tpu.dynamic_rotate %96 by %c255_i32_48 dim 1 : vector<4x256xf32>, i32 -> vector<4x256xf32>
    %cst_49 = arith.constant 0xFF800000 : f32
    %98 = vector.broadcast %cst_49 : f32 to vector<4x256xf32>
    %99 = arith.select %7, %97, %98 : vector<4x256xi1>, vector<4x256xf32>
    %c1_i32_50 = arith.constant 1 : i32
    %100 = tpu.dynamic_rotate %96 by %c1_i32_50 dim 1 : vector<4x256xf32>, i32 -> vector<4x256xf32>
    %cst_51 = arith.constant 0xFF800000 : f32
    %101 = vector.broadcast %cst_51 : f32 to vector<4x256xf32>
    %102 = arith.select %11, %100, %101 : vector<4x256xi1>, vector<4x256xf32>
    %103 = arith.maximumf %99, %102 : vector<4x256xf32>
    %c240_i32_52 = arith.constant 240 : i32
    %104 = tpu.dynamic_rotate %103 by %c240_i32_52 dim 1 : vector<4x256xf32>, i32 -> vector<4x256xf32>
    %cst_53 = arith.constant 0xFF800000 : f32
    %105 = vector.broadcast %cst_53 : f32 to vector<4x256xf32>
    %106 = arith.select %15, %104, %105 : vector<4x256xi1>, vector<4x256xf32>
    %107 = arith.maximumf %103, %106 : vector<4x256xf32>
    %c16_i32_54 = arith.constant 16 : i32
    %108 = tpu.dynamic_rotate %103 by %c16_i32_54 dim 1 : vector<4x256xf32>, i32 -> vector<4x256xf32>
    %cst_55 = arith.constant 0xFF800000 : f32
    %109 = vector.broadcast %cst_55 : f32 to vector<4x256xf32>
    %110 = arith.select %19, %108, %109 : vector<4x256xi1>, vector<4x256xf32>
    %111 = arith.maximumf %107, %110 : vector<4x256xf32>
    %c240_i32_56 = arith.constant 240 : i32
    %112 = tpu.dynamic_rotate %111 by %c240_i32_56 dim 1 : vector<4x256xf32>, i32 -> vector<4x256xf32>
    %cst_57 = arith.constant 0xFF800000 : f32
    %113 = vector.broadcast %cst_57 : f32 to vector<4x256xf32>
    %114 = arith.select %15, %112, %113 : vector<4x256xi1>, vector<4x256xf32>
    %c16_i32_58 = arith.constant 16 : i32
    %115 = tpu.dynamic_rotate %111 by %c16_i32_58 dim 1 : vector<4x256xf32>, i32 -> vector<4x256xf32>
    %cst_59 = arith.constant 0xFF800000 : f32
    %116 = vector.broadcast %cst_59 : f32 to vector<4x256xf32>
    %117 = arith.select %19, %115, %116 : vector<4x256xi1>, vector<4x256xf32>
    %118 = arith.maximumf %114, %117 : vector<4x256xf32>
    %c0_60 = arith.constant 0 : index
    %c3 = arith.constant 3 : index
    %c0_61 = arith.constant 0 : index
    %c0_62 = arith.constant 0 : index
    %119 = vector.load %arg4[%c0_60, %c3, %c0_61, %c0_62] : memref<1x4x4x256xf32, #tpu.memory_space<vmem>>, vector<1x1x4x256xf32>
    %120 = vector.shape_cast %119 : vector<1x1x4x256xf32> to vector<4x256xf32>
    %121 = vector.shape_cast %118 : vector<4x256xf32> to vector<1x1x4x256xf32>
    tpu.vector_store %arg4[%c0_60, %c3, %c0_61, %c0_62], %121 {strides = array<i32>} : memref<1x4x4x256xf32, #tpu.memory_space<vmem>>, vector<1x1x4x256xf32>,
    return
  }
  func.func @transform_0(%arg0: i32, %arg1: i32) -> (i32, i32) {
    %c0_i32 = arith.constant 0 : i32
    %c0_i32_0 = arith.constant 0 : i32
    %c0_i32_1 = arith.constant 0 : i32
    return %c0_i32, %c0_i32_0 : i32, i32
  }
  func.func @transform_1(%arg0: i32, %arg1: i32) -> (i32, i32, i32) {
    %c0_i32 = arith.constant 0 : i32
    %c0_i32_0 = arith.constant 0 : i32
    return %arg0, %arg1, %c0_i32 : i32, i32, i32
  }
  func.func @transform_2(%arg0: i32, %arg1: i32) -> (i32, i32, i32, i32) {
    %c0_i32 = arith.constant 0 : i32
    %c0_i32_0 = arith.constant 0 : i32
    %c0_i32_1 = arith.constant 0 : i32
    return %arg0, %c0_i32, %arg1, %c0_i32_0 : i32, i32, i32, i32
  }
}

</mosaic_0001>

<bundles_post_ra>
// kernel: tpu_custom_call.1
= control target key start
LH: loop header
LB: loop body
LE: loop exit
PB: predicated region body
PF: predicated region fallthrough
CT: control target
= control target key end

     0   :  { %7 = vsyncpa [#allocation3], 0  ;;  %s1349_s0 = inlined_call_operand.hbm [shape: s32[1,256], index: 0, kind: input, shape index: {}]   ;;  %s1350_s1 = inlined_call_operand.hbm [shape: f32[2,4,256], index: 1, kind: input, shape index: {}]   ;;  %s1351_s2 = inlined_call_operand.hbm [shape: f32[2,4,4,256], index: 2, kind: output, shape index: {}]  }
   0x1   :  { %8 = vsyncpa [#allocation6], 0 }
   0x2   :  { %10 = vsyncpa [#allocation6 + $0x1], 0 }
   0x3   :  { %11 = vsyncpa [#allocation4], 0 }
   0x4   :  { %13 = vsyncpa [#allocation4 + $0x1], 0  ;;  %s884_s9 = smov 0   ;;  %s886_s10 = smov 0  }
   0x5   :  { %s888_s11 = smov 0   ;;  %s890_s12 = smov 0  }
   0x6   :  { %s892_s13 = smov 0   ;;  %s894_s14 = smov 0  }
   0x7 LB: > { %s610_s15 = sadd.s32 4294967295, %s857_s14   ;;  %s611_s16 = sadd.s32 4294967294, %s857_s14   ;;  %s857_s14 = sphi %s894_s14, %s19_s14   ;;  %s853_s13 = sphi %s892_s13, %s1376_s13   ;;  %s849_s12 = sphi %s890_s12, %s1375_s12   ;;  %s845_s11 = sphi %s888_s11, %s1374_s11   ;;  %s841_s10 = sphi %s886_s10, %s1373_s10   ;;  %s837_s9 = sphi %s884_s9, %s1372_s9  }
   0x8   : > { %p74_p0 = scmp.ne.s32.totalorder %s841_s10, %s837_s9  ;;  %p918_p1 = scmp.eq.s32.totalorder %s610_s15, 0 }
   0x9   : > { %p922_p2 = scmp.eq.s32.totalorder %s610_s15, 1  ;;  %p106_p3 = scmp.eq.s32.totalorder %s611_s16, 1 }
   0xa   : > { %s1356_s17 = scalar_select %p918_p1, 1, 0 }
   0xb   : > { %s1357_s18 = scalar_select %p922_p2, 1, 0 }
   0xc   : > { %p928_p4 = por %p918_p1, %p74_p0  ;;  %p612_p5 = scmp.ge.s32.totalorder %s857_s14, 1 }
   0xd   : > { %p933_p6 = por %p106_p3, %p74_p0  ;;  %p113_p7 = scmp.lt.s32.totalorder %s857_s14, 3 }
   0xe   : > { %s1358_s19 = scalar_select %p928_p4, 1, 0 }
   0xf   : > { %s1359_s20 = scalar_select %p933_p6, 1, 0 }
  0x10   : > { %p938_p8 = pnand %p612_p5, %p113_p7  ;;  %s859_s22 = smov [#allocation2]  }
  0x11   : > { %s126_s23 = sshll.u32 %s859_s22, 4  ;;  %s31_s25 = sadd.s32 1, %s853_s13  ;;  %s127_s23 = int_to_ptr.vmem [resolvable:$true] %s126_s23 }
  0x12   : > { %s1360_s21 = scalar_select %p938_p8, 1, 0 }
  0x13   : > { %p640_p10 = pneg %p938_p8  ;;  %s61_s26 = sadd.s32 1, %s845_s11 }
  0x14   : > { %p953_p12 = scmp.ge.s32.totalorder %s31_s25, 2  ;;  %s713_s30 = scalar_lea.hbm %s1349_s0, 32 }
  0x15   : > { %p947_p11 = pnand %p640_p10, %p918_p1  ;;  %p714_p13 = scmp.ne.s32.totalorder %s1349_s0, %s713_s30 }
  0x16   : > { %s1362_s27 = scalar_select %p953_p12, 1, 0 }
  0x17   : > { %p715_p0 = pneg %p947_p11  ;;  %p720_p7 = scmp.lt.u32.totalorder %s713_s30, %s1349_s0 }
  0x19   : > { %p716_p3 = pnand %p715_p0, %p714_p13 }
  0x1b   : > { %p717_p5 = pneg %p716_p3 }
  0x1d   : > { %p722_p10 = pnand %p720_p7, %p717_p5 }
  0x1f   : > { %725 = shalt.err (!%p722_p10)
}
  0x20   : > { %s726_s7 = scalar_lea.vmem %s127_s23, 32  ;;  %p734_p1 = scmp.lt.s32.totalorder %s127_s23, %s127_s23 }
  0x21   : > { %p727_p9 = scmp.ne.s32.totalorder %s127_s23, %s726_s7  ;;  %p735_p8 = scmp.lt.s32.totalorder %s726_s7, %s726_s7 }
  0x23   : > { %p729_p6 = pnand %p727_p9, %p715_p0  ;;  %p736_p2 = por %p735_p8, %p734_p1 }
  0x25   : > { %p730_p4 = pneg %p729_p6 }
  0x27   : > { %p737_p12 = pnand %p736_p2, %p730_p4 }
  0x29   : > { %740 = shalt.err (!%p737_p12)
}
  0x2a   : > { %643 = dma.hbm_to_vmem [thread:$0]  (!%p947_p11), %s1349_s0, 32, %s127_s23, [#allocation3]  }
  0x2b   : > { %p1363_p1 = scmp.ne.s32.totalorder %s1362_s27, 0  ;;  %p68_p2 = scmp.ne.s32.totalorder %s845_s11, %s841_s10 }
  0x2c   : > { %p69_p4 = scmp.eq.s32.totalorder %s857_s14, 0  ;;  %p653_p6 = scmp.lt.s32.totalorder %s857_s14, 2 }
  0x2d   : > { %s1378_s25 = smov (%p1363_p1, %s31_s25), 0  ;;  %p1364_p12 = scmp.ne.s32.totalorder %s1357_s18, 0 }
  0x2e   : > { %s56_s16 = ssub.s32 %s853_s13, %s1378_s25  ;;  %p70_p9 = por %p69_p4, %p68_p2 }
  0x2f   : > { %p59_p8 = scmp.eq.s32.totalorder %s56_s16, 0  ;;  %p985_p13 = por %p1364_p12, %p68_p2 }
  0x30   : > { %s137_s24 = sand.u32 1, %s845_s11   ;;  %s630_s27 = sshll.u32 %s853_s13, 7 }
  0x31   : > { %s993_s28 = scalar_select %p59_p8, %s845_s11, %s61_s26  }
  0x32   : > { %s615_s23 = sshll.u32 %s137_s24, 3  ;;  %s999_s3 = scalar_lea.hbm %s1350_s1, %s630_s27 }
  0x33   : > { %s141_s18 = scalar_lea.vmem [#allocation5], %s615_s23  ;;  %p1003_p11 = pnand %p653_p6, %p70_p9 }
  0x34   : > { %s151_s4 = sshll.u32 %s141_s18, 4  ;;  %s138_s26 = scalar_lea.sflag [#allocation6], %s137_s24  ;;  %s1001_s4 = int_to_ptr.vmem [resolvable:$true] %s151_s4 }
  0x35   : > { %s741_s6 = scalar_lea.hbm %s999_s3, 128  ;;  %p743_p3 = pneg %p1003_p11 }
  0x36   : > { %p742_p0 = scmp.ne.s32.totalorder %s999_s3, %s741_s6  ;;  %s746_s15 = scalar_lea.hbm %s1350_s1, 256 }
  0x37   : > { %p747_p10 = scmp.lt.u32.totalorder %s999_s3, %s1350_s1  ;;  %p748_p1 = scmp.lt.u32.totalorder %s746_s15, %s741_s6 }
  0x38   : > { %p744_p5 = pnand %p743_p3, %p742_p0  ;;  %p750_p4 = scmp.lt.u32.totalorder %s741_s6, %s999_s3 }
  0x39   : > { %p749_p2 = por %p748_p1, %p747_p10 }
  0x3a   : > { %p745_p7 = pneg %p744_p5 }
  0x3b   : > { %p751_p6 = por %p750_p4, %p749_p2 }
  0x3d   : > { %p752_p8 = pnand %p751_p6, %p745_p7 }
  0x3f   : > { %755 = shalt.err (!%p752_p8)
}
  0x40   : > { %s756_s24 = scalar_lea.vmem %s1001_s4, 128  ;;  %s860_s27 = smov [#allocation5]  }
  0x41   : > { %p757_p9 = scmp.ne.s32.totalorder %s1001_s4, %s756_s24  ;;  %s761_s29 = sshll.u32 %s860_s27, 4  ;;  %s762_s29 = int_to_ptr.vmem [resolvable:$false] %s761_s29 }
  0x42   : > { %s763_s30 = scalar_lea.vmem %s762_s29, 256  ;;  %p764_p5 = scmp.lt.s32.totalorder %s1001_s4, %s762_s29 }
  0x43   : > { %p759_p12 = pnand %p757_p9, %p743_p3  ;;  %p765_p10 = scmp.lt.s32.totalorder %s763_s30, %s756_s24 }
  0x45   : > { %p760_p0 = pneg %p759_p12  ;;  %p766_p1 = por %p765_p10, %p764_p5 }
  0x47   : > { %p767_p2 = pnand %p766_p1, %p760_p0 }
  0x49   : > { %770 = shalt.err (!%p767_p2)
}
  0x4a   : > { %647 = dma.hbm_to_vmem [thread:$0]  (!%p1003_p11), %s999_s3, 128, %s1001_s4, %s138_s26  }
  0x4b   : > { %p1367_p7 = scmp.ne.s32.totalorder %s1360_s21, 0 }
  0x4c   : > { %p1368_p3 = scmp.ne.s32.totalorder (!%p1367_p7), %s1356_s17, 0 }
  0x4d   : > { %160 = sbr.rel (%p1367_p7) target bundleno = 1590 (0x636), region = 28 }
  0x54   : > { %824 = dma.done.wait (%p1368_p3), [#allocation3], 32  }
  0x55   : > { %826 = vsyncadd (%p1368_p3), [#allocation3], 4294967264  ;;  %s1039_s18 = sand.u32 1, %s841_s10   ;;  %p1369_p4 = scmp.ne.s32.totalorder %s1358_s19, 0 }
  0x56   : > { %s620_s6 = sshll.u32 %s1039_s18, 3  ;;  %s167_s5 = scalar_lea.sflag [#allocation6], %s1039_s18 }
  0x57   : > { %s170_s7 = scalar_lea.vmem [#allocation5], %s620_s6 }
  0x58   : > { %828 = dma.done.wait (%p1369_p4), %s167_s5, 128  }
  0x59   : > { %830 = vsyncadd (%p1369_p4), %s167_s5, 4294967168  ;;  %s621_s21 = sshll.u32 %s1039_s18, 5  ;;  %v191_v0 = vld [vmem:[%s170_s7] sm:$0xff]  ;;  %s861_s3 = smov 1   ;;  %v193_v2 = vlaneseq  ;;  %v192_v3 = vld [vmem:[#allocation2] sm:$0x3] }
  0x5a   : > { %250 = vrot.lane.b32.xlu1 %v191_v0, %s861_s3  ;;  %s1049_s17 = scalar_lea.vmem [#allocation7], %s621_s21  ;;  %s862_s4 = smov 127   ;;  %v234_v1 = vcombine.high %v191_v0, %v191_v0  ;;  %vm208_vm0 = vcmp.ge.s32.totalorder %v192_v3, 1  ;;  %vm196_vm1 = vcmp.lt.s32.totalorder %v192_v3, 15  ;;  %v863_v7 = vmov 0  }
  0x5b   : > { %232 = vst [vmem:[%s1049_s17] sm:$0xff] %v191_v0  ;;  %236 = vrot.lane.b32.xlu0 %v191_v0, %s862_s4  ;;  %v199_v4 = vshrl.u32 %v193_v2, 7  ;;  %v209_v8 = vsel %vm208_vm0, 1, %v863_v7  ;;  %v197_v9 = vsel %vm196_vm1, 1, %v863_v7  ;;  %v1055_v10 = vand.u32 127, %v193_v2  ;;  %s864_s19 = smov 112   ;;  %s865_s26 = smov 16  }
  0x5c   : > { %s511_s8 = sshll.u32 %s1049_s17, 4  ;;  %s631_s15 = sshll.u32 %s849_s12, 9  ;;  %s1299_s8 = int_to_ptr.vmem [resolvable:$true] %s511_s8 }
  0x5d   : > { %v200_v5 = vsub.s32 0, %v199_v4  ;;  %v204_v6 = vsub.s32 1, %v199_v4  ;;  %vm254_vm2 = vcmp.lt.s32.totalorder %v1055_v10, 1  ;;  %vm240_vm3 = vcmp.lt.s32.totalorder %v1055_v10, 127  ;;  %s1297_s24 = scalar_lea.hbm %s1351_s2, %s631_s15  ;;  %s496_s12 = scalar_lea.sflag [#allocation4], %s1039_s18 }
  0x5e   : > { %252 = vrot.lane.b32.xlu1 %v234_v1, %s861_s3  ;;  %v1112_v46 = vadd.s32 128, %v1055_v10  ;;  %vm289_vm8 = vcmp.lt.s32.totalorder %v1055_v10, 112  ;;  %vm300_vm10 = vcmp.lt.s32.totalorder %v1055_v10, 16  ;;  %vm226_vm11 = vcmp.ge.s32.totalorder %v1055_v10, 16  ;;  %s771_s27 = scalar_lea.vmem %s1299_s8, 512  ;;  %s866_s29 = smov [#allocation7]  }
  0x5f   : > { %238 = vrot.lane.b32.xlu0 %v234_v1, %s862_s4  ;;  %v1057_v11 = vrot.slane %v209_v8, %v200_v5  ;;  %v1059_v12 = vrot.slane %v209_v8, %v204_v6  ;;  %v1061_v13 = vrot.slane %v197_v9, %v200_v5  ;;  %v1063_v14 = vrot.slane %v197_v9, %v204_v6  ;;  %p772_p11 = scmp.ne.s32.totalorder %s1299_s8, %s771_s27  ;;  %s775_s30 = sshll.u32 %s866_s29, 4  ;;  %s776_s30 = int_to_ptr.vmem [resolvable:$false] %s775_s30 }
  0x60   : > { %vm221_vm9 = vcmp.lt.s32.totalorder %v1112_v46, 240  ;;  %s777_s6 = scalar_lea.vmem %s776_s30, 1024  ;;  %p778_p9 = scmp.lt.s32.totalorder %s1299_s8, %s776_s30 }
  0x61   : > { %vm218_vm4 = vcmp.eq.s32.totalorder %v1057_v11, 1  ;;  %vm219_vm5 = vcmp.eq.s32.totalorder %v1059_v12, 1  ;;  %vm206_vm6 = vcmp.eq.s32.totalorder %v1061_v13, 1  ;;  %vm207_vm7 = vcmp.eq.s32.totalorder %v1063_v14, 1  ;;  %p773_p6 = pnand %p772_p11, %p985_p13  ;;  %p779_p12 = scmp.lt.s32.totalorder %s777_s6, %s771_s27 }
  0x63   : > { %p774_p8 = pneg %p773_p6  ;;  %p780_p0 = por %p779_p12, %p778_p9 }
  0x65   : > { %p781_p5 = pnand %p780_p0, %p774_p8 }
  0xcc   : > { %v251_v15 = vpop.permute.xlu1 %250 }
  0xcd   : > { %v237_v16 = vpop.permute.xlu0 %236 }
  0xd0   : > { %v253_v17 = vpop.permute.xlu1 %252 }
  0xd1   : > { %v239_v18 = vpop.permute.xlu0 %238  ;;  %v255_v19 = vsel %vm254_vm2, %v251_v15, %v253_v17  ;;  %v256_v20 = vsel %vm254_vm2, %v253_v17, %v251_v15 }
  0xd2   : > { %v241_v21 = vsel %vm240_vm3, %v237_v16, %v239_v18  ;;  %v242_v22 = vsel %vm240_vm3, %v239_v18, %v237_v16  ;;  %v257_v23 = vsel %vm218_vm4, %v256_v20, -inf  ;;  %v258_v24 = vsel %vm219_vm5, %v255_v19, -inf }
  0xd3   : > { %v243_v25 = vsel %vm206_vm6, %v241_v21, -inf  ;;  %v244_v26 = vsel %vm207_vm7, %v242_v22, -inf  ;;  %v261_v28 = vcombine.low %v257_v23, %v258_v24 }
  0xd4   : > { %v247_v27 = vcombine.low %v243_v25, %v244_v26 }
  0xd6   : > { %v249_v29 = vmax.f32 %v191_v0, %v247_v27 }
  0xd8   : > { %v263_v30 = vmax.f32 %v249_v29, %v261_v28 }
  0xda   : > { %267 = vrot.lane.b32.xlu0 %v263_v30, %s862_s4  ;;  %v265_v31 = vcombine.high %v263_v30, %v263_v30 }
  0xdc   : > { %269 = vrot.lane.b32.xlu1 %v265_v31, %s862_s4 }
  0xde   : > { %275 = vrot.lane.b32.xlu0 %v263_v30, %s861_s3 }
  0xe0   : > { %277 = vrot.lane.b32.xlu1 %v265_v31, %s861_s3 }
 0x14c   : > { %v268_v32 = vpop.permute.xlu0 %267 }
 0x14e   : > { %v270_v33 = vpop.permute.xlu1 %269 }
 0x14f   : > { %v271_v34 = vsel %vm240_vm3, %v268_v32, %v270_v33  ;;  %v272_v35 = vsel %vm240_vm3, %v270_v33, %v268_v32 }
 0x150   : > { %v276_v36 = vpop.permute.xlu0 %275  ;;  %v273_v40 = vsel %vm206_vm6, %v271_v34, -inf  ;;  %v274_v41 = vsel %vm207_vm7, %v272_v35, -inf }
 0x152   : > { %v278_v37 = vpop.permute.xlu1 %277 }
 0x153   : > { %v279_v38 = vsel %vm254_vm2, %v276_v36, %v278_v37  ;;  %v280_v39 = vsel %vm254_vm2, %v278_v37, %v276_v36 }
 0x154   : > { %v281_v42 = vsel %vm218_vm4, %v280_v39, -inf  ;;  %v282_v43 = vsel %vm219_vm5, %v279_v38, -inf }
 0x155   : > { %v283_v44 = vmax.f32 %v273_v40, %v281_v42  ;;  %v284_v45 = vmax.f32 %v274_v41, %v282_v43 }
 0x157   : > { %285 = vrot.lane.b32.xlu0 %v283_v44, %s864_s19  ;;  %287 = vrot.lane.b32.xlu1 %v284_v45, %s864_s19 }
 0x15b   : > { %296 = vrot.lane.b32.xlu0 %v283_v44, %s865_s26  ;;  %298 = vrot.lane.b32.xlu1 %v284_v45, %s865_s26 }
 0x1c9   : > { %v286_v47 = vpop.permute.xlu0 %285  ;;  %v288_v48 = vpop.permute.xlu1 %287 }
 0x1ca   : > { %v291_v49 = vsel %vm289_vm8, %v288_v48, %v286_v47  ;;  %v290_v50 = vsel %vm289_vm8, %v286_v47, %v288_v48 }
 0x1cb   : > { %v293_v51 = vsel %vm221_vm9, %v291_v49, -inf  ;;  %v294_v55 = vmax.f32 %v283_v44, %v290_v50 }
 0x1cc   : > { %v295_v52 = vmax.f32 %v284_v45, %v293_v51 }
 0x1cd   : > { %v297_v53 = vpop.permute.xlu0 %296  ;;  %v299_v54 = vpop.permute.xlu1 %298 }
 0x1ce   : > { %v301_v56 = vsel %vm300_vm10, %v297_v53, %v299_v54  ;;  %v302_v57 = vsel %vm300_vm10, %v299_v54, %v297_v53 }
 0x1cf   : > { %v303_v58 = vsel %vm226_vm11, %v302_v57, -inf  ;;  %v306_v59 = vmax.f32 %v295_v52, %v301_v56 }
 0x1d0   : > { %v305_v60 = vmax.f32 %v294_v55, %v303_v58 }
 0x1d1   : > { %309 = vrot.lane.b32.xlu1 %v306_v59, %s864_s19 }
 0x1d2   : > { %307 = vrot.lane.b32.xlu0 %v305_v60, %s864_s19 }
 0x1d5   : > { %317 = vrot.lane.b32.xlu1 %v306_v59, %s865_s26 }
 0x1d6   : > { %315 = vrot.lane.b32.xlu0 %v305_v60, %s865_s26 }
 0x243   : > { %v310_v61 = vpop.permute.xlu1 %309 }
 0x244   : > { %v308_v62 = vpop.permute.xlu0 %307 }
 0x245   : > { %v312_v63 = vsel %vm289_vm8, %v310_v61, %v308_v62  ;;  %v311_v5 = vsel %vm289_vm8, %v308_v62, %v310_v61 }
 0x246   : > { %v314_v2 = vsel %vm221_vm9, %v312_v63, -inf }
 0x247   : > { %v318_v0 = vpop.permute.xlu1 %317 }
 0x248   : > { %v316_v1 = vpop.permute.xlu0 %315 }
 0x249   : > { %v319_v3 = vsel %vm300_vm10, %v316_v1, %v318_v0  ;;  %v320_v4 = vsel %vm300_vm10, %v318_v0, %v316_v1 }
 0x24a   : > { %v321_v6 = vsel %vm226_vm11, %v320_v4, -inf  ;;  %v324_v7 = vmax.f32 %v314_v2, %v319_v3 }
 0x24b   : > { %v323_v8 = vmax.f32 %v311_v5, %v321_v6 }
 0x24c   : > { %333 = vrot.lane.b32.xlu1 %v324_v7, %s862_s4 }
 0x24d   : > { %v327_v9 = vcombine.low %v323_v8, %v324_v7  ;;  %331 = vrot.lane.b32.xlu0 %v323_v8, %s862_s4 }
 0x24f   : > { %622 = vst [vmem:[%s1049_s17 + $0x8] sm:$0xff] %v327_v9 }
 0x250   : > { %343 = vrot.lane.b32.xlu1 %v324_v7, %s861_s3 }
 0x251   : > { %341 = vrot.lane.b32.xlu0 %v323_v8, %s861_s3 }
 0x2be   : > { %v334_v15 = vpop.permute.xlu1 %333 }
 0x2bf   : > { %v332_v16 = vpop.permute.xlu0 %331 }
 0x2c0   : > { %v335_v17 = vsel %vm240_vm3, %v332_v16, %v334_v15  ;;  %v336_v18 = vsel %vm240_vm3, %v334_v15, %v332_v16 }
 0x2c1   : > { %v337_v19 = vsel %vm206_vm6, %v335_v17, -inf  ;;  %v338_v20 = vsel %vm207_vm7, %v336_v18, -inf }
 0x2c2   : > { %v344_v21 = vpop.permute.xlu1 %343  ;;  %v339_v23 = vmax.f32 %v323_v8, %v337_v19  ;;  %v340_v24 = vmax.f32 %v324_v7, %v338_v20 }
 0x2c3   : > { %v342_v22 = vpop.permute.xlu0 %341 }
 0x2c4   : > { %v345_v25 = vsel %vm254_vm2, %v342_v22, %v344_v21  ;;  %v346_v26 = vsel %vm254_vm2, %v344_v21, %v342_v22 }
 0x2c5   : > { %v347_v27 = vsel %vm218_vm4, %v346_v26, -inf  ;;  %v348_v28 = vsel %vm219_vm5, %v345_v25, -inf }
 0x2c6   : > { %v349_v29 = vmax.f32 %v339_v23, %v347_v27  ;;  %v350_v30 = vmax.f32 %v340_v24, %v348_v28 }
 0x2c8   : > { %351 = vrot.lane.b32.xlu0 %v349_v29, %s862_s4  ;;  %353 = vrot.lane.b32.xlu1 %v350_v30, %s862_s4 }
 0x2cc   : > { %359 = vrot.lane.b32.xlu0 %v349_v29, %s861_s3  ;;  %361 = vrot.lane.b32.xlu1 %v350_v30, %s861_s3 }
 0x33a   : > { %v352_v31 = vpop.permute.xlu0 %351  ;;  %v354_v32 = vpop.permute.xlu1 %353 }
 0x33b   : > { %v355_v33 = vsel %vm240_vm3, %v352_v31, %v354_v32  ;;  %v356_v34 = vsel %vm240_vm3, %v354_v32, %v352_v31 }
 0x33c   : > { %v357_v39 = vsel %vm206_vm6, %v355_v33, -inf  ;;  %v358_v40 = vsel %vm207_vm7, %v356_v34, -inf }
 0x33e   : > { %v360_v35 = vpop.permute.xlu0 %359  ;;  %v362_v36 = vpop.permute.xlu1 %361 }
 0x33f   : > { %v363_v37 = vsel %vm254_vm2, %v360_v35, %v362_v36  ;;  %v364_v38 = vsel %vm254_vm2, %v362_v36, %v360_v35 }
 0x340   : > { %v365_v41 = vsel %vm218_vm4, %v364_v38, -inf  ;;  %v366_v42 = vsel %vm219_vm5, %v363_v37, -inf }
 0x341   : > { %v367_v43 = vmax.f32 %v357_v39, %v365_v41  ;;  %v368_v44 = vmax.f32 %v358_v40, %v366_v42 }
 0x343   : > { %369 = vrot.lane.b32.xlu0 %v367_v43, %s864_s19  ;;  %371 = vrot.lane.b32.xlu1 %v368_v44, %s864_s19 }
 0x347   : > { %379 = vrot.lane.b32.xlu0 %v367_v43, %s865_s26  ;;  %381 = vrot.lane.b32.xlu1 %v368_v44, %s865_s26 }
 0x3b5   : > { %v370_v45 = vpop.permute.xlu0 %369  ;;  %v372_v47 = vpop.permute.xlu1 %371 }
 0x3b6   : > { %v374_v48 = vsel %vm289_vm8, %v372_v47, %v370_v45  ;;  %v373_v49 = vsel %vm289_vm8, %v370_v45, %v372_v47 }
 0x3b7   : > { %v376_v50 = vsel %vm221_vm9, %v374_v48, -inf  ;;  %v377_v54 = vmax.f32 %v367_v43, %v373_v49 }
 0x3b8   : > { %v378_v51 = vmax.f32 %v368_v44, %v376_v50 }
 0x3b9   : > { %v380_v52 = vpop.permute.xlu0 %379  ;;  %v382_v53 = vpop.permute.xlu1 %381 }
 0x3ba   : > { %v383_v55 = vsel %vm300_vm10, %v380_v52, %v382_v53  ;;  %v384_v56 = vsel %vm300_vm10, %v382_v53, %v380_v52 }
 0x3bb   : > { %v385_v57 = vsel %vm226_vm11, %v384_v56, -inf  ;;  %v388_v58 = vmax.f32 %v378_v51, %v383_v55 }
 0x3bc   : > { %v387_v59 = vmax.f32 %v377_v54, %v385_v57 }
 0x3bd   : > { %391 = vrot.lane.b32.xlu1 %v388_v58, %s864_s19 }
 0x3be   : > { %389 = vrot.lane.b32.xlu0 %v387_v59, %s864_s19 }
 0x3c1   : > { %399 = vrot.lane.b32.xlu1 %v388_v58, %s865_s26 }
 0x3c2   : > { %397 = vrot.lane.b32.xlu0 %v387_v59, %s865_s26 }
 0x42f   : > { %v392_v60 = vpop.permute.xlu1 %391 }
 0x430   : > { %v390_v61 = vpop.permute.xlu0 %389 }
 0x431   : > { %v394_v62 = vsel %vm289_vm8, %v392_v60, %v390_v61  ;;  %v393_v4 = vsel %vm289_vm8, %v390_v61, %v392_v60 }
 0x432   : > { %v396_v1 = vsel %vm221_vm9, %v394_v62, -inf }
 0x433   : > { %v400_v63 = vpop.permute.xlu1 %399 }
 0x434   : > { %v398_v0 = vpop.permute.xlu0 %397 }
 0x435   : > { %v401_v2 = vsel %vm300_vm10, %v398_v0, %v400_v63  ;;  %v402_v3 = vsel %vm300_vm10, %v400_v63, %v398_v0 }
 0x436   : > { %v403_v5 = vsel %vm226_vm11, %v402_v3, -inf  ;;  %v406_v6 = vmax.f32 %v396_v1, %v401_v2 }
 0x437   : > { %v405_v7 = vmax.f32 %v393_v4, %v403_v5 }
 0x438   : > { %415 = vrot.lane.b32.xlu1 %v406_v6, %s862_s4 }
 0x439   : > { %v409_v8 = vcombine.low %v405_v7, %v406_v6  ;;  %413 = vrot.lane.b32.xlu0 %v405_v7, %s862_s4 }
 0x43b   : > { %623 = vst [vmem:[%s1049_s17 + $0x10] sm:$0xff] %v409_v8 }
 0x43c   : > { %425 = vrot.lane.b32.xlu1 %v406_v6, %s861_s3 }
 0x43d   : > { %423 = vrot.lane.b32.xlu0 %v405_v7, %s861_s3 }
 0x4aa   : > { %v416_v9 = vpop.permute.xlu1 %415 }
 0x4ab   : > { %v414_v15 = vpop.permute.xlu0 %413 }
 0x4ac   : > { %v417_v16 = vsel %vm240_vm3, %v414_v15, %v416_v9  ;;  %v418_v17 = vsel %vm240_vm3, %v416_v9, %v414_v15 }
 0x4ad   : > { %v419_v18 = vsel %vm206_vm6, %v417_v16, -inf  ;;  %v420_v19 = vsel %vm207_vm7, %v418_v17, -inf }
 0x4ae   : > { %v426_v20 = vpop.permute.xlu1 %425  ;;  %v421_v22 = vmax.f32 %v405_v7, %v419_v18  ;;  %v422_v23 = vmax.f32 %v406_v6, %v420_v19 }
 0x4af   : > { %v424_v21 = vpop.permute.xlu0 %423 }
 0x4b0   : > { %v427_v24 = vsel %vm254_vm2, %v424_v21, %v426_v20  ;;  %v428_v25 = vsel %vm254_vm2, %v426_v20, %v424_v21 }
 0x4b1   : > { %v429_v26 = vsel %vm218_vm4, %v428_v25, -inf  ;;  %v430_v27 = vsel %vm219_vm5, %v427_v24, -inf }
 0x4b2   : > { %v431_v28 = vmax.f32 %v421_v22, %v429_v26  ;;  %v432_v29 = vmax.f32 %v422_v23, %v430_v27 }
 0x4b4   : > { %433 = vrot.lane.b32.xlu0 %v431_v28, %s862_s4  ;;  %435 = vrot.lane.b32.xlu1 %v432_v29, %s862_s4 }
 0x4b8   : > { %441 = vrot.lane.b32.xlu0 %v431_v28, %s861_s3  ;;  %443 = vrot.lane.b32.xlu1 %v432_v29, %s861_s3 }
 0x526   : > { %v434_v30 = vpop.permute.xlu0 %433  ;;  %v436_v31 = vpop.permute.xlu1 %435 }
 0x527   : > { %v437_v32 = vsel %vm240_vm3, %v434_v30, %v436_v31  ;;  %v438_v33 = vsel %vm240_vm3, %v436_v31, %v434_v30 }
 0x528   : > { %v439_v38 = vsel %vm206_vm6, %v437_v32, -inf  ;;  %v440_v39 = vsel %vm207_vm7, %v438_v33, -inf }
 0x52a   : > { %v442_v34 = vpop.permute.xlu0 %441  ;;  %v444_v35 = vpop.permute.xlu1 %443 }
 0x52b   : > { %v445_v36 = vsel %vm254_vm2, %v442_v34, %v444_v35  ;;  %v446_v37 = vsel %vm254_vm2, %v444_v35, %v442_v34 }
 0x52c   : > { %v447_v40 = vsel %vm218_vm4, %v446_v37, -inf  ;;  %v448_v41 = vsel %vm219_vm5, %v445_v36, -inf }
 0x52d   : > { %v449_v42 = vmax.f32 %v439_v38, %v447_v40  ;;  %v450_v43 = vmax.f32 %v440_v39, %v448_v41 }
 0x52f   : > { %451 = vrot.lane.b32.xlu0 %v449_v42, %s864_s19  ;;  %453 = vrot.lane.b32.xlu1 %v450_v43, %s864_s19 }
 0x533   : > { %461 = vrot.lane.b32.xlu0 %v449_v42, %s865_s26  ;;  %463 = vrot.lane.b32.xlu1 %v450_v43, %s865_s26 }
 0x5a1   : > { %v452_v13 = vpop.permute.xlu0 %451  ;;  %v454_v44 = vpop.permute.xlu1 %453 }
 0x5a2   : > { %v456_v14 = vsel %vm289_vm8, %v454_v44, %v452_v13  ;;  %v455_v11 = vsel %vm289_vm8, %v452_v13, %v454_v44 }
 0x5a3   : > { %v458_v12 = vsel %vm221_vm9, %v456_v14, -inf  ;;  %v459_v49 = vmax.f32 %v449_v42, %v455_v11 }
 0x5a4   : > { %v460_v45 = vmax.f32 %v450_v43, %v458_v12 }
 0x5a5   : > { %v462_v47 = vpop.permute.xlu0 %461  ;;  %v464_v48 = vpop.permute.xlu1 %463 }
 0x5a6   : > { %v465_v50 = vsel %vm300_vm10, %v462_v47, %v464_v48  ;;  %v466_v51 = vsel %vm300_vm10, %v464_v48, %v462_v47 }
 0x5a7   : > { %v467_v52 = vsel %vm226_vm11, %v466_v51, -inf  ;;  %v470_v53 = vmax.f32 %v460_v45, %v465_v50 }
 0x5a8   : > { %v469_v54 = vmax.f32 %v459_v49, %v467_v52 }
 0x5a9   : > { %473 = vrot.lane.b32.xlu1 %v470_v53, %s864_s19 }
 0x5aa   : > { %471 = vrot.lane.b32.xlu0 %v469_v54, %s864_s19 }
 0x5ad   : > { %481 = vrot.lane.b32.xlu1 %v470_v53, %s865_s26 }
 0x5ae   : > { %479 = vrot.lane.b32.xlu0 %v469_v54, %s865_s26 }
 0x61b   : > { %v474_v55 = vpop.permute.xlu1 %473 }
 0x61c   : > { %v472_v56 = vpop.permute.xlu0 %471 }
 0x61d   : > { %v476_v57 = vsel %vm289_vm8, %v474_v55, %v472_v56  ;;  %v475_v63 = vsel %vm289_vm8, %v472_v56, %v474_v55 }
 0x61e   : > { %v478_v60 = vsel %vm221_vm9, %v476_v57, -inf }
 0x61f   : > { %v482_v58 = vpop.permute.xlu1 %481 }
 0x620   : > { %v480_v59 = vpop.permute.xlu0 %479 }
 0x621   : > { %v483_v61 = vsel %vm300_vm10, %v480_v59, %v482_v58  ;;  %v484_v62 = vsel %vm300_vm10, %v482_v58, %v480_v59 }
 0x622   : > { %v485_v0 = vsel %vm226_vm11, %v484_v62, -inf  ;;  %v488_v1 = vmax.f32 %v478_v60, %v483_v61 }
 0x623   : > { %v487_v2 = vmax.f32 %v475_v63, %v485_v0 }
 0x625   : > { %v491_v46 = vcombine.low %v487_v2, %v488_v1 }
 0x627   : > { %624 = vst [vmem:[%s1049_s17 + $0x18] sm:$0xff] %v491_v46 }
 0x628   : > { %784 = shalt.err (!%p781_p5)
}
 0x629   : > { %s785_s5 = scalar_lea.hbm %s1297_s24, 512  ;;  %s789_s3 = scalar_lea.hbm %s1351_s2, 1024 }
 0x62a   : > { %p786_p10 = scmp.ne.s32.totalorder %s1297_s24, %s785_s5  ;;  %p790_p7 = scmp.lt.u32.totalorder %s1297_s24, %s1351_s2 }
 0x62b   : > { %p791_p3 = scmp.lt.u32.totalorder %s789_s3, %s785_s5  ;;  %p793_p11 = scmp.lt.u32.totalorder %s785_s5, %s1297_s24 }
 0x62c   : > { %p787_p1 = pnand %p786_p10, %p985_p13 }
 0x62d   : > { %p792_p4 = por %p791_p3, %p790_p7 }
 0x62e   : > { %p788_p2 = pneg %p787_p1 }
 0x62f   : > { %p794_p6 = por %p793_p11, %p792_p4 }
 0x631   : > { %p795_p8 = pnand %p794_p6, %p788_p2 }
 0x633   : > { %798 = shalt.err (!%p795_p8)
}
 0x634   : > { %s867_s19 = smov 128   ;;  %s868_s26 = smov 8  }
 0x635   : > { %638 = dma.vmem_to_hbm [thread:$0]  (%p985_p13), %s1299_s8, 512, %s1297_s24, %s496_s12, %s867_s19, %s867_s19, %s868_s26  }
 0x636 PF: > { %s526_s15 = sand.u32 1, %s837_s9   ;;  %p1370_p9 = scmp.ne.s32.totalorder %s1359_s20, 0 }
 0x637   : > { %p1371_p12 = scmp.ge.s32.totalorder %s857_s14, 2  ;;  %s527_s16 = scalar_lea.sflag [#allocation4], %s526_s15 }
 0x639   : > { %p649_p0 = pnand %p1371_p12, %p1370_p9 }
 0x63b   : > { %832 = dma.done.wait (!%p649_p0), %s527_s16, 512  }
 0x63c   : > { %834 = vsyncadd (!%p649_p0), %s527_s16, 4294966784  ;;  %s19_s14 = sadd.s32 1, %s857_s14   ;;  %s1372_s9 = smov %s841_s10 }
 0x63d   : > { %p16_p5 = scmp.ge.s32.totalorder %s19_s14, 4   ;;  %s1373_s10 = smov %s845_s11 }
 0x63e   : > { %s1374_s11 = smov %s993_s28  ;;  %s1375_s12 = smov %s853_s13 }
 0x63f   : > { %s1376_s13 = smov %s1378_s25  ;;  %18 = sbr.rel (!%p16_p5) target bundleno = 7 (0x7), region = 81 }
 0x646   :  { %532 = vsyncpa [#allocation3], 1 }
 0x647   :  { %534 = vsyncpa [#allocation3 + $0x1], 1 }
 0x648   :  { %535 = vsyncpa [#allocation6], 1 }
 0x649   :  { %537 = vsyncpa [#allocation6 + $0x1], 1 }
 0x64a   :  { %538 = vsyncpa [#allocation4], 1 }
 0x64b   :  { %540 = vsyncpa [#allocation4 + $0x1], 1 }

</bundles_post_ra>
